<compile_context>
chip_gen: v7x
topology: tpu7x:2x2x1
jax: 0.10.0
libtpu: 0.0.40
codegen_flags: <defaults>
</compile_context>

<pallas_src>
import jax
import jax.numpy as jnp
from jax import lax
from jax.experimental import pallas as pl
from jax.experimental.pallas import tpu as pltpu

EPS = 1e-5  # nn.BatchNorm1d default


def _dual_bn_neck_kernel(mni_ref, mnv_ref, x_ref, gv_ref, bv_ref, gi_ref, bi_ref, o_ref):
    x = x_ref[...]            # (N, T) f32
    mn_i = mni_ref[...]       # (N, 1) f32 = mask_i / count_i   (0 elsewhere)
    mn_v = mnv_ref[...]       # (N, 1) f32 = mask_v / count_v

    def scale_shift(mn, gamma, beta):
        # Single pass over x: count-normalized masked sum and sum of squares.
        xw = x * mn                                           # (N, T)
        mean = jnp.sum(xw, axis=0, keepdims=True)             # E[x]    (1, T)
        ex2 = jnp.sum(xw * x, axis=0, keepdims=True)          # E[x^2]  (1, T)
        var = jnp.maximum(ex2 - mean * mean, 0.0)             # biased variance
        scale = gamma * lax.rsqrt(var + EPS)                  # (1, T)
        shift = beta - mean * scale                           # (1, T)
        return scale, shift

    sc_i, sh_i = scale_shift(mn_i, gi_ref[...], bi_ref[...])
    sc_v, sh_v = scale_shift(mn_v, gv_ref[...], bv_ref[...])

    # Fused epilogue: per-row selected affine.  Rows with sub not in {0, 1}
    # get scale 1 / shift 0, i.e. pass-through (the clone semantics).
    mi_b = mn_i > 0.0                                         # (N, 1) bool
    mv_b = mn_v > 0.0
    scale_sel = jnp.where(mi_b, sc_i, jnp.where(mv_b, sc_v, 1.0))   # (N, T)
    shift_sel = jnp.where(mi_b, sh_i, jnp.where(mv_b, sh_v, 0.0))   # (N, T)
    o_ref[...] = (x * scale_sel + shift_sel).astype(o_ref.dtype)


def dual_bn_neck(x, sub, gamma_v, beta_v, gamma_i, beta_i):
    """x: (N, D) f32, sub: (N,) int. Returns (N, D) f32."""
    n, d = x.shape
    n_pad = ((n + 7) // 8) * 8              # sublane-aligned rows
    d_pad = ((d + 127) // 128) * 128        # lane-dense features

    # Largest lane-tile (multiple of 128) dividing d_pad, with each
    # (n_pad, tile_d) f32 buffer budgeted at ~2 MiB (double-buffered in/out).
    cap = max(128, min(2048, ((512 * 1024) // n_pad) // 128 * 128))
    tile_d = 128
    t = cap
    while t >= 128:
        if d_pad % t == 0:
            tile_d = t
            break
        t -= 128
    num_tiles = d_pad // tile_d

    x_p = jnp.pad(x.astype(jnp.float32), ((0, n_pad - n), (0, d_pad - d)))

    def pad_param(p):
        return jnp.pad(p.astype(jnp.float32).reshape(1, d), ((0, 0), (0, d_pad - d)))

    gv, bv, gi, bi = map(pad_param, (gamma_v, beta_v, gamma_i, beta_i))

    # Hoist compare / cast / count-reduction / divide out of the kernel:
    # pass count-normalized masks, (N, 1) f32.
    sub_col = sub.reshape(n, 1)
    m_i = (sub_col == 1).astype(jnp.float32)
    m_v = (sub_col == 0).astype(jnp.float32)
    mn_i = m_i / jnp.maximum(m_i.sum(), 1.0)
    mn_v = m_v / jnp.maximum(m_v.sum(), 1.0)
    mn_i = jnp.pad(mn_i, ((0, n_pad - n), (0, 0)))
    mn_v = jnp.pad(mn_v, ((0, n_pad - n), (0, 0)))

    cost = pl.CostEstimate(
        flops=int(14 * n_pad * d_pad),
        transcendentals=int(2 * d_pad),                       # rsqrt per feature per branch
        bytes_accessed=int((2 * n_pad * d_pad + 4 * d_pad + 2 * n_pad) * 4),
    )

    out_p = pl.pallas_call(
        _dual_bn_neck_kernel,
        out_shape=jax.ShapeDtypeStruct((n_pad, d_pad), jnp.float32),
        grid=(num_tiles,),
        in_specs=[
            pl.BlockSpec((n_pad, 1), lambda j: (0, 0)),        # mask_i / cnt_i (reused)
            pl.BlockSpec((n_pad, 1), lambda j: (0, 0)),        # mask_v / cnt_v (reused)
            pl.BlockSpec((n_pad, tile_d), lambda j: (0, j)),   # x tile
            pl.BlockSpec((1, tile_d), lambda j: (0, j)),       # gamma_v
            pl.BlockSpec((1, tile_d), lambda j: (0, j)),       # beta_v
            pl.BlockSpec((1, tile_d), lambda j: (0, j)),       # gamma_i
            pl.BlockSpec((1, tile_d), lambda j: (0, j)),       # beta_i
        ],
        out_specs=pl.BlockSpec((n_pad, tile_d), lambda j: (0, j)),
        compiler_params=pltpu.CompilerParams(
            dimension_semantics=("parallel",),
            vmem_limit_bytes=32 * 1024 * 1024,
        ),
        cost_estimate=cost,
    )(mn_i, mn_v, x_p, gv, bv, gi, bi)

    return out_p[:n, :d]


def _reference(x, sub, gamma_v, beta_v, gamma_i, beta_i):
    """Pure-JAX reference mirroring the PyTorch forward (training mode)."""
    def masked_bn(mask, gamma, beta):
        m = mask.astype(jnp.float32)[:, None]
        cnt = jnp.maximum(m.sum(), 1.0)
        mean = (x * m).sum(0, keepdims=True) / cnt
        var = (m * (x - mean) ** 2).sum(0, keepdims=True) / cnt
        return gamma * (x - mean) / jnp.sqrt(var + EPS) + beta

    y_i = masked_bn(sub == 1, gamma_i, beta_i)
    y_v = masked_bn(sub == 0, gamma_v, beta_v)
    out = jnp.where((sub == 1)[:, None], y_i, x)
    out = jnp.where((sub == 0)[:, None], y_v, out)
    return out


if __name__ == "__main__":
    N, DIM = 8, 32  # small (batch, dim) BatchNorm1d-style input

    key = jax.random.PRNGKey(0)
    kx, kgv, kgi = jax.random.split(key, 3)
    x = jax.random.normal(kx, (N, DIM), dtype=jnp.float32)
    # Includes a sub==2 row to exercise the clone / pass-through path.
    sub = jnp.array([0, 1, 0, 1, 2, 0, 1, 1], dtype=jnp.int32)

    # Deterministic parameters: gammas random-but-fixed, biases constant 0
    # (matching nn.init.constant_(bias, 0) in __init__).
    gamma_v = 1.0 + 0.1 * jax.random.normal(kgv, (DIM,), dtype=jnp.float32)
    gamma_i = 1.0 + 0.1 * jax.random.normal(kgi, (DIM,), dtype=jnp.float32)
    beta_v = jnp.zeros((DIM,), dtype=jnp.float32)
    beta_i = jnp.zeros((DIM,), dtype=jnp.float32)

    out = dual_bn_neck(x, sub, gamma_v, beta_v, gamma_i, beta_i)
    out = jax.block_until_ready(out)

    ref = _reference(x, sub, gamma_v, beta_v, gamma_i, beta_i)
    assert out.shape == (N, DIM) and out.dtype == jnp.float32
    assert jnp.allclose(out, ref, atol=1e-4, rtol=1e-4), "mismatch vs reference"

    print("KERNEL_OK")
</pallas_src>

<mosaic_0001>
module attributes {stable_mosaic.version = 11 : i64} {
  func.func @_dual_bn_neck_kernel(%arg0: i32, %arg1: memref<8x1xf32, #tpu.memory_space<vmem>>, %arg2: memref<8x1xf32, #tpu.memory_space<vmem>>, %arg3: memref<8x128xf32, #tpu.memory_space<vmem>>, %arg4: memref<1x128xf32, #tpu.memory_space<vmem>>, %arg5: memref<1x128xf32, #tpu.memory_space<vmem>>, %arg6: memref<1x128xf32, #tpu.memory_space<vmem>>, %arg7: memref<1x128xf32, #tpu.memory_space<vmem>>, %arg8: memref<8x128xf32, #tpu.memory_space<vmem>>) attributes {dimension_semantics = [#tpu.dimension_semantics<parallel>], iteration_bounds = array<i64: 1>, scalar_prefetch = 0 : i64, scratch_operands = 0 : i64, tpu.core_type = #tpu.core_type<tc>, window_params = [{pipeline_mode = #tpu.pipeline_mode<synchronous>, transform_indices = @transform_0, window_bounds = array<i64: 8, 1>}, {pipeline_mode = #tpu.pipeline_mode<synchronous>, transform_indices = @transform_1, window_bounds = array<i64: 8, 1>}, {transform_indices = @transform_2, window_bounds = array<i64: 8, 128>}, {transform_indices = @transform_3, window_bounds = array<i64: 1, 128>}, {transform_indices = @transform_4, window_bounds = array<i64: 1, 128>}, {transform_indices = @transform_5, window_bounds = array<i64: 1, 128>}, {transform_indices = @transform_6, window_bounds = array<i64: 1, 128>}, {transform_indices = @transform_7, window_bounds = array<i64: 8, 128>}]} {
    %c0 = arith.constant 0 : index
    %c0_0 = arith.constant 0 : index
    %0 = vector.load %arg3[%c0, %c0_0] : memref<8x128xf32, #tpu.memory_space<vmem>>, vector<8x128xf32>
    %c0_1 = arith.constant 0 : index
    %c0_2 = arith.constant 0 : index
    %1 = vector.load %arg1[%c0_1, %c0_2] : memref<8x1xf32, #tpu.memory_space<vmem>>, vector<8x1xf32>
    %c0_3 = arith.constant 0 : index
    %c0_4 = arith.constant 0 : index
    %2 = vector.load %arg2[%c0_3, %c0_4] : memref<8x1xf32, #tpu.memory_space<vmem>>, vector<8x1xf32>
    %c0_5 = arith.constant 0 : index
    %c0_6 = arith.constant 0 : index
    %3 = vector.load %arg6[%c0_5, %c0_6] : memref<1x128xf32, #tpu.memory_space<vmem>>, vector<1x128xf32>
    %c0_7 = arith.constant 0 : index
    %c0_8 = arith.constant 0 : index
    %4 = vector.load %arg7[%c0_7, %c0_8] : memref<1x128xf32, #tpu.memory_space<vmem>>, vector<1x128xf32>
    %5 = vector.broadcast %1 : vector<8x1xf32> to vector<8x128xf32>
    %6 = arith.mulf %0, %5 : vector<8x128xf32>
    %cst = arith.constant dense<0.000000e+00> : vector<128xf32>
    %7 = vector.multi_reduction <add>, %6, %cst [0] : vector<8x128xf32> to vector<128xf32>
    %8 = vector.shape_cast %7 : vector<128xf32> to vector<1x128xf32>
    %9 = arith.mulf %6, %0 : vector<8x128xf32>
    %cst_9 = arith.constant dense<0.000000e+00> : vector<128xf32>
    %10 = vector.multi_reduction <add>, %9, %cst_9 [0] : vector<8x128xf32> to vector<128xf32>
    %11 = vector.shape_cast %10 : vector<128xf32> to vector<1x128xf32>
    %12 = arith.mulf %8, %8 : vector<1x128xf32>
    %13 = arith.subf %11, %12 : vector<1x128xf32>
    %cst_10 = arith.constant 0.000000e+00 : f32
    %14 = vector.broadcast %cst_10 : f32 to vector<1x128xf32>
    %15 = arith.maximumf %13, %14 : vector<1x128xf32>
    %cst_11 = arith.constant 9.99999974E-6 : f32
    %16 = vector.broadcast %cst_11 : f32 to vector<1x128xf32>
    %17 = arith.addf %15, %16 : vector<1x128xf32>
    %18 = math.rsqrt %17 : vector<1x128xf32>
    %19 = arith.mulf %3, %18 : vector<1x128xf32>
    %20 = arith.mulf %8, %19 : vector<1x128xf32>
    %21 = arith.subf %4, %20 : vector<1x128xf32>
    %c0_12 = arith.constant 0 : index
    %c0_13 = arith.constant 0 : index
    %22 = vector.load %arg4[%c0_12, %c0_13] : memref<1x128xf32, #tpu.memory_space<vmem>>, vector<1x128xf32>
    %c0_14 = arith.constant 0 : index
    %c0_15 = arith.constant 0 : index
    %23 = vector.load %arg5[%c0_14, %c0_15] : memref<1x128xf32, #tpu.memory_space<vmem>>, vector<1x128xf32>
    %24 = vector.broadcast %2 : vector<8x1xf32> to vector<8x128xf32>
    %25 = arith.mulf %0, %24 : vector<8x128xf32>
    %cst_16 = arith.constant dense<0.000000e+00> : vector<128xf32>
    %26 = vector.multi_reduction <add>, %25, %cst_16 [0] : vector<8x128xf32> to vector<128xf32>
    %27 = vector.shape_cast %26 : vector<128xf32> to vector<1x128xf32>
    %28 = arith.mulf %25, %0 : vector<8x128xf32>
    %cst_17 = arith.constant dense<0.000000e+00> : vector<128xf32>
    %29 = vector.multi_reduction <add>, %28, %cst_17 [0] : vector<8x128xf32> to vector<128xf32>
    %30 = vector.shape_cast %29 : vector<128xf32> to vector<1x128xf32>
    %31 = arith.mulf %27, %27 : vector<1x128xf32>
    %32 = arith.subf %30, %31 : vector<1x128xf32>
    %cst_18 = arith.constant 0.000000e+00 : f32
    %33 = vector.broadcast %cst_18 : f32 to vector<1x128xf32>
    %34 = arith.maximumf %32, %33 : vector<1x128xf32>
    %cst_19 = arith.constant 9.99999974E-6 : f32
    %35 = vector.broadcast %cst_19 : f32 to vector<1x128xf32>
    %36 = arith.addf %34, %35 : vector<1x128xf32>
    %37 = math.rsqrt %36 : vector<1x128xf32>
    %38 = arith.mulf %22, %37 : vector<1x128xf32>
    %39 = arith.mulf %27, %38 : vector<1x128xf32>
    %40 = arith.subf %23, %39 : vector<1x128xf32>
    %cst_20 = arith.constant 0.000000e+00 : f32
    %41 = vector.broadcast %cst_20 : f32 to vector<8x1xf32>
    %42 = arith.cmpf ogt, %1, %41 : vector<8x1xf32>
    %cst_21 = arith.constant 0.000000e+00 : f32
    %43 = vector.broadcast %cst_21 : f32 to vector<8x1xf32>
    %44 = arith.cmpf ogt, %2, %43 : vector<8x1xf32>
    %cst_22 = arith.constant 1.000000e+00 : f32
    %45 = vector.shape_cast %44 : vector<8x1xi1> to vector<8x1xi1>
    %46 = vector.broadcast %45 : vector<8x1xi1> to vector<8x128xi1>
    %47 = vector.shape_cast %38 : vector<1x128xf32> to vector<1x128xf32>
    %48 = vector.broadcast %47 : vector<1x128xf32> to vector<8x128xf32>
    %49 = vector.broadcast %cst_22 : f32 to vector<8x128xf32>
    %50 = arith.select %46, %48, %49 : vector<8x128xi1>, vector<8x128xf32>
    %51 = vector.shape_cast %42 : vector<8x1xi1> to vector<8x1xi1>
    %52 = vector.broadcast %51 : vector<8x1xi1> to vector<8x128xi1>
    %53 = vector.shape_cast %19 : vector<1x128xf32> to vector<1x128xf32>
    %54 = vector.broadcast %53 : vector<1x128xf32> to vector<8x128xf32>
    %55 = arith.select %52, %54, %50 : vector<8x128xi1>, vector<8x128xf32>
    %cst_23 = arith.constant 0.000000e+00 : f32
    %56 = vector.shape_cast %44 : vector<8x1xi1> to vector<8x1xi1>
    %57 = vector.broadcast %56 : vector<8x1xi1> to vector<8x128xi1>
    %58 = vector.shape_cast %40 : vector<1x128xf32> to vector<1x128xf32>
    %59 = vector.broadcast %58 : vector<1x128xf32> to vector<8x128xf32>
    %60 = vector.broadcast %cst_23 : f32 to vector<8x128xf32>
    %61 = arith.select %57, %59, %60 : vector<8x128xi1>, vector<8x128xf32>
    %62 = vector.shape_cast %42 : vector<8x1xi1> to vector<8x1xi1>
    %63 = vector.broadcast %62 : vector<8x1xi1> to vector<8x128xi1>
    %64 = vector.shape_cast %21 : vector<1x128xf32> to vector<1x128xf32>
    %65 = vector.broadcast %64 : vector<1x128xf32> to vector<8x128xf32>
    %66 = arith.select %63, %65, %61 : vector<8x128xi1>, vector<8x128xf32>
    %67 = arith.mulf %0, %55 : vector<8x128xf32>
    %68 = arith.addf %67, %66 : vector<8x128xf32>
    %c0_24 = arith.constant 0 : index
    %c0_25 = arith.constant 0 : index
    %69 = vector.load %arg8[%c0_24, %c0_25] : memref<8x128xf32, #tpu.memory_space<vmem>>, vector<8x128xf32>
    tpu.vector_store %arg8[%c0_24, %c0_25], %68 {strides = array<i32>} : memref<8x128xf32, #tpu.memory_space<vmem>>, vector<8x128xf32>,
    return
  }
  func.func @transform_0(%arg0: i32) -> (i32, i32) {
    %c0_i32 = arith.constant 0 : i32
    %c0_i32_0 = arith.constant 0 : i32
    %c0_i32_1 = arith.constant 0 : i32
    return %c0_i32, %c0_i32_0 : i32, i32
  }
  func.func @transform_1(%arg0: i32) -> (i32, i32) {
    %c0_i32 = arith.constant 0 : i32
    %c0_i32_0 = arith.constant 0 : i32
    %c0_i32_1 = arith.constant 0 : i32
    return %c0_i32, %c0_i32_0 : i32, i32
  }
  func.func @transform_2(%arg0: i32) -> (i32, i32) {
    %c0_i32 = arith.constant 0 : i32
    %c0_i32_0 = arith.constant 0 : i32
    return %c0_i32, %arg0 : i32, i32
  }
  func.func @transform_3(%arg0: i32) -> (i32, i32) {
    %c0_i32 = arith.constant 0 : i32
    %c0_i32_0 = arith.constant 0 : i32
    return %c0_i32, %arg0 : i32, i32
  }
  func.func @transform_4(%arg0: i32) -> (i32, i32) {
    %c0_i32 = arith.constant 0 : i32
    %c0_i32_0 = arith.constant 0 : i32
    return %c0_i32, %arg0 : i32, i32
  }
  func.func @transform_5(%arg0: i32) -> (i32, i32) {
    %c0_i32 = arith.constant 0 : i32
    %c0_i32_0 = arith.constant 0 : i32
    return %c0_i32, %arg0 : i32, i32
  }
  func.func @transform_6(%arg0: i32) -> (i32, i32) {
    %c0_i32 = arith.constant 0 : i32
    %c0_i32_0 = arith.constant 0 : i32
    return %c0_i32, %arg0 : i32, i32
  }
  func.func @transform_7(%arg0: i32) -> (i32, i32) {
    %c0_i32 = arith.constant 0 : i32
    %c0_i32_0 = arith.constant 0 : i32
    return %c0_i32, %arg0 : i32, i32
  }
}

</mosaic_0001>

<bundles_post_ra>
// kernel: tpu_custom_call.1
= control target key start
LH: loop header
LB: loop body
LE: loop exit
PB: predicated region body
PF: predicated region fallthrough
CT: control target
= control target key end

     0   :  { %s259_s0 = inlined_call_operand.vmem [shape: f32[8,1], index: 0, kind: input, shape index: {}]   ;;  %s260_s1 = inlined_call_operand.vmem [shape: f32[8,1], index: 1, kind: input, shape index: {}]   ;;  %s261_s2 = inlined_call_operand.vmem [shape: f32[8,128], index: 2, kind: input, shape index: {}]   ;;  %s262_s3 = inlined_call_operand.vmem [shape: f32[1,128], index: 3, kind: input, shape index: {}]   ;;  %s263_s4 = inlined_call_operand.vmem [shape: f32[1,128], index: 4, kind: input, shape index: {}]   ;;  %s264_s5 = inlined_call_operand.vmem [shape: f32[1,128], index: 5, kind: input, shape index: {}]   ;;  %s265_s6 = inlined_call_operand.vmem [shape: f32[1,128], index: 6, kind: input, shape index: {}]   ;;  %s266_s7 = inlined_call_operand.hbm [shape: f32[8,128], index: 7, kind: output, shape index: {}]  }
   0x1   :  { %v29_v0 = vld [vmem:[%s260_s1] sm:$0xff] }
   0x2   :  { %v28_v1 = vld [vmem:[%s259_s0] sm:$0xff] }
   0x3   :  { %12 = vsyncpa [#allocation3], 0  ;;  %v177_v2 = vmov 0   ;;  %vm89_vm0 = vcmp.gt.f32.partialorder %v29_v0, 0.0  ;;  %vm88_vm1 = vcmp.gt.f32.partialorder %v28_v1, 0.0  ;;  %v228_v5 = vld [vmem:[%s261_s2] sm:$0xff]  ;;  %v96_v44 = vlaneseq }
   0x4   :  { %147 = vset.pattern.permute.xlu0 %v177_v2  ;;  %148 = vset.pattern.permute.xlu1 %v177_v2  ;;  %v90_v3 = vsel %vm89_vm0, 1, %v177_v2  ;;  %v102_v4 = vsel %vm88_vm1, 1, %v177_v2  ;;  %v59_v46 = vld [vmem:[%s262_s3] sm:$0x1] }
   0x5   :  { %63 = vperm.xlu0 %147, %v29_v0   ;;  %92 = vperm.xlu1 %148, %v90_v3   ;;  %v97_v45 = vshrl.u32 %v96_v44, 7  ;;  %v60_v51 = vld [vmem:[%s263_s4] sm:$0x1]  ;;  %s178_s4 = smov [#allocation2]  }
   0x6   :  { %v30_v52 = vld [vmem:[%s264_s5] sm:$0x1]  ;;  %s137_s5 = sshll.u32 %s178_s4, 4  ;;  %s138_s5 = int_to_ptr.vmem [resolvable:$true] %s137_s5 }
   0x7   :  { %v98_v49 = vsub.s32 0, %v97_v45  ;;  %v31_v59 = vld [vmem:[%s265_s6] sm:$0x1]  ;;  %s153_s11 = scalar_lea.vmem %s138_s5, 128  ;;  %p158_p1 = scmp.lt.s32.totalorder %s138_s5, %s138_s5 }
   0x8   :  { %p154_p0 = scmp.ne.s32.totalorder %s138_s5, %s153_s11  ;;  %p159_p2 = scmp.lt.s32.totalorder %s153_s11, %s153_s11 }
   0x9   :  { %34 = vperm.xlu0 %147, %v28_v1   ;;  %104 = vperm.xlu1 %148, %v102_v4  }
   0xa   :  { %p160_p3 = por %p159_p2, %p158_p1 }
   0xc   :  { %p161_p4 = pnand %p160_p3, %p154_p0 }
  0x84   :  { %v64_v6 = vpop.permute.xlu0 %63  ;;  %v93_v47 = vpop.permute.xlu1 %92 }
  0x85   :  { %v66_v7 = vmul.f32 %v64_v6, %v228_v5  ;;  %vm94_vm2 = vcmp.eq.s32.totalorder %v93_v47, 1 }
  0x87   :  { %v67_v8 = vrot.slane %v66_v7, 4  ;;  %v73_v9 = vmul.f32 %v66_v7, %v228_v5 }
  0x88   :  { %v35_v10 = vpop.permute.xlu0 %34  ;;  %v105_v57 = vpop.permute.xlu1 %104 }
  0x89   :  { %v68_v11 = vadd.f32 %v67_v8, %v66_v7  ;;  %v74_v12 = vrot.slane %v73_v9, 4  ;;  %v37_v13 = vmul.f32 %v35_v10, %v228_v5  ;;  %vm106_vm3 = vcmp.eq.s32.totalorder %v105_v57, 1 }
  0x8b   :  { %v69_v14 = vrot.slane %v68_v11, 2  ;;  %v75_v15 = vadd.f32 %v74_v12, %v73_v9  ;;  %v38_v16 = vrot.slane %v37_v13, 4  ;;  %v44_v17 = vmul.f32 %v37_v13, %v228_v5 }
  0x8d   :  { %v70_v18 = vadd.f32 %v69_v14, %v68_v11  ;;  %v76_v19 = vrot.slane %v75_v15, 2  ;;  %v39_v20 = vadd.f32 %v38_v16, %v37_v13  ;;  %v45_v21 = vrot.slane %v44_v17, 4 }
  0x8f   :  { %v71_v22 = vrot.slane %v70_v18, 1  ;;  %v77_v23 = vadd.f32 %v76_v19, %v75_v15  ;;  %v40_v24 = vrot.slane %v39_v20, 2  ;;  %v46_v25 = vadd.f32 %v45_v21, %v44_v17 }
  0x91   :  { %v72_v26 = vadd.f32 %v71_v22, %v70_v18  ;;  %v78_v27 = vrot.slane %v77_v23, 1  ;;  %v41_v28 = vadd.f32 %v40_v24, %v39_v20  ;;  %v47_v29 = vrot.slane %v46_v25, 2 }
  0x93   :  { %v79_v30 = vadd.f32 %v78_v27, %v77_v23  ;;  %v80_v31 = vmul.f32 %v72_v26, %v72_v26  ;;  %v42_v32 = vrot.slane %v41_v28, 1  ;;  %v48_v33 = vadd.f32 %v47_v29, %v46_v25 }
  0x95   :  { %v81_v34 = vsub.f32 %v79_v30, %v80_v31  ;;  %v43_v35 = vadd.f32 %v42_v32, %v41_v28  ;;  %v49_v36 = vrot.slane %v48_v33, 1 }
  0x97   :  { %v82_v37 = vmax.f32 %v81_v34, 0.0  ;;  %v50_v38 = vadd.f32 %v49_v36, %v48_v33  ;;  %v51_v39 = vmul.f32 %v43_v35, %v43_v35 }
  0x99   :  { %v83_v40 = vadd.f32 1e-05, %v82_v37  ;;  %v52_v41 = vsub.f32 %v50_v38, %v51_v39 }
  0x9b   :  { %149 = vrsqrt.f32 %v83_v40  ;;  %v53_v42 = vmax.f32 %v52_v41, 0.0 }
  0x9d   :  { %v54_v43 = vadd.f32 1e-05, %v53_v42 }
  0x9f   :  { %151 = vrsqrt.f32 %v54_v43 }
  0xa5   :  { %v150_v48 = vpop.eup %149 }
  0xa6   :  { %v85_v50 = vmul.f32 %v150_v48, %v59_v46 }
  0xa8   :  { %v86_v53 = vmul.f32 %v85_v50, %v72_v26  ;;  %v99_v55 = vrot.slane %v85_v50, %v98_v49 }
  0xa9   :  { %v152_v54 = vpop.eup %151 }
  0xaa   :  { %v87_v56 = vsub.f32 %v60_v51, %v86_v53  ;;  %v56_v58 = vmul.f32 %v152_v54, %v30_v52  ;;  %v101_v62 = vsel %vm94_vm2, %v99_v55, 1.0 }
  0xac   :  { %v57_v60 = vmul.f32 %v56_v58, %v43_v35  ;;  %v111_v61 = vrot.slane %v56_v58, %v98_v49  ;;  %v118_v63 = vrot.slane %v87_v56, %v98_v49 }
  0xae   :  { %v58_v0 = vsub.f32 %v31_v59, %v57_v60  ;;  %v113_v1 = vsel %vm106_vm3, %v111_v61, %v101_v62  ;;  %v120_v3 = vsel %vm94_vm2, %v118_v63, 0.0 }
  0xaf   :  { %v128_v4 = vmul.f32 %v113_v1, %v228_v5 }
  0xb0   :  { %v125_v2 = vrot.slane %v58_v0, %v98_v49 }
  0xb2   :  { %v127_v6 = vsel %vm106_vm3, %v125_v2, %v120_v3 }
  0xb3   :  { %v129_v7 = vadd.f32 %v128_v4, %v127_v6 }
  0xb5   :  { %130 = vst [vmem:[#allocation2] sm:$0xff] %v129_v7 }
  0xb6   :  { %164 = shalt.err (!%p161_p4)
}
  0xb7   :  { %s165_s13 = scalar_lea.hbm %s266_s7, 128 }
  0xb8   :  { %p166_p5 = scmp.ne.s32.totalorder %s266_s7, %s165_s13  ;;  %p169_p6 = scmp.lt.u32.totalorder %s165_s13, %s266_s7 }
  0xba   :  { %p171_p7 = pnand %p169_p6, %p166_p5 }
  0xbc   :  { %174 = shalt.err (!%p171_p7)
}
  0xbd   :  { %140 = dma.vmem_to_hbm [thread:$0]  %s138_s5, 128, %s266_s7, [#allocation3]  }
  0xbe   :  { %175 = dma.done.wait [#allocation3], 128  }
  0xbf   :  { %176 = vsyncadd [#allocation3], 4294967168 }
  0xc0   :  { %144 = vsyncpa [#allocation3], 1 }

</bundles_post_ra>
